<compile_context>
chip_gen: v5e
topology: v5e:2x2
jax: 0.10.0
libtpu: 0.0.40
codegen_flags: <defaults>
</compile_context>

<pallas_src>
import functools

import jax
import jax.numpy as jnp
from jax.experimental import pallas as pl
from jax.experimental.pallas import tpu as pltpu


_NLA_FNS = {
    "tanh": jnp.tanh,
    "relu": jax.nn.relu,
    "sigmoid": jax.nn.sigmoid,
}


def _mlp_kernel(n_hidden_layers, nla_name, *refs):
    """Fused MLP kernel.

    refs layout:
      refs[0]                      : x_ref     (tb, ARCH[0])         bf16
      refs[1 + 2*i], refs[2 + 2*i] : w_i, b_i  (d_i, d_{i+1}) bf16, (1, d_{i+1}) f32
      refs[1 + 2*L], refs[2 + 2*L] : w_out^T, b_out  (1, d_last) bf16, (1, 1) f32
      refs[-1]                     : o_ref     (1, tb)  -- batch on the lane axis
    """
    x_ref = refs[0]
    o_ref = refs[-1]
    nla = _NLA_FNS[nla_name]

    h = x_ref[...]  # bf16 (tb, d0) -> straight into the MXU
    for i in range(n_hidden_layers):
        w_ref = refs[1 + 2 * i]
        b_ref = refs[2 + 2 * i]
        # bf16 x bf16 -> f32 accumulate on the MXU; bias add + NLA in f32 (VPU/EUP).
        z = jnp.dot(h, w_ref[...], preferred_element_type=jnp.float32) + b_ref[...]
        h = nla(z).astype(jnp.bfloat16)  # single downcast point before next matmul

    w_out_ref = refs[1 + 2 * n_hidden_layers]  # (1, d_last) bf16  (pre-transposed)
    b_out_ref = refs[2 + 2 * n_hidden_layers]  # (1, 1) f32
    # Contract over features: (1, d) . (tb, d) -> (1, tb): lane-dense output tile.
    logits = jax.lax.dot_general(
        w_out_ref[...], h,
        dimension_numbers=(((1,), (1,)), ((), ())),
        preferred_element_type=jnp.float32,
    ) + b_out_ref[...]
    o_ref[...] = jax.nn.sigmoid(logits).astype(o_ref.dtype)


def bernoulli_mlp_forward(x, params, *, block_batch=512, nla="tanh"):
    """params: list of (W, b); W is (in, out), b is (1, out). Last pair is the `out` layer.

    Returns (B, 1) float32 probabilities, matching BernoulliMLP.forward.
    """
    B, d0 = x.shape
    n_hidden = len(params) - 1

    # Batch tile: multiple of 8 (sublane), capped by block_batch; pad ragged batches.
    tb = min(block_batch, ((B + 7) // 8) * 8)
    tb = max(8, (tb // 8) * 8)
    B_pad = ((B + tb - 1) // tb) * tb
    num_tiles = B_pad // tb

    x_p = x if B_pad == B else jnp.pad(x, ((0, B_pad - B), (0, 0)))
    x_bf = x_p.astype(jnp.bfloat16)

    # Flatten params in kernel order; weights -> bf16 (MXU), biases stay f32.
    flat = []
    for i, (w, b) in enumerate(params):
        if i < n_hidden:
            flat.append(w.astype(jnp.bfloat16))             # (d_i, d_{i+1})
        else:
            flat.append(jnp.transpose(w).astype(jnp.bfloat16))  # (1, d_last)
        flat.append(b.astype(jnp.float32))
    # x tiled over batch; all weights/biases fully resident in VMEM.
    in_specs = [pl.BlockSpec((tb, d0), lambda i: (i, 0))]
    for arr in flat:
        in_specs.append(pl.BlockSpec(arr.shape, lambda i: (0, 0)))
    # Lane-dense output: one (1, tb) row per batch tile.
    out_specs = pl.BlockSpec((1, tb), lambda i: (i, 0))

    kernel = functools.partial(_mlp_kernel, n_hidden, nla)

    out = pl.pallas_call(
        kernel,
        out_shape=jax.ShapeDtypeStruct((num_tiles, tb), jnp.float32),
        grid=(num_tiles,),
        in_specs=in_specs,
        out_specs=out_specs,
        compiler_params=pltpu.CompilerParams(
            dimension_semantics=("parallel",),  # shards batch tiles across v7x's 2 TCs
            vmem_limit_bytes=64 << 20,          # headroom if tb / hidden widths grow (v5e default is 16 MiB)
        ),
    )(x_bf, *flat)

    # (num_tiles, tb) row-major flatten == batch order; trim padding.
    return out.reshape(B_pad, 1)[:B]


def init_params(key, arch):
    """Deterministic init matching BernoulliMLP shapes (root=False: biases present).

    PyTorch Linear(in, out) has weight (out, in); we store transposed (in, out).
    """
    params = []
    dims = list(arch) + [1]  # final `out` layer maps ARCH[-1] -> 1
    for i in range(len(dims) - 1):
        key, kw, kb = jax.random.split(key, 3)
        bound = 1.0 / jnp.sqrt(dims[i])
        w = jax.random.uniform(kw, (dims[i], dims[i + 1]), jnp.float32, -bound, bound)
        b = jax.random.uniform(kb, (1, dims[i + 1]), jnp.float32, -bound, bound)
        params.append((w, b))
    return params


def reference_forward_f32(x, params):
    h = x
    for w, b in params[:-1]:
        h = jnp.tanh(h @ w + b)
    w, b = params[-1]
    return jax.nn.sigmoid(h @ w + b)


def reference_forward_bf16(x, params):
    """Same bf16-in / f32-accumulate recipe as the kernel, in plain JAX."""
    h = x.astype(jnp.bfloat16)
    for w, b in params[:-1]:
        z = jnp.dot(h, w.astype(jnp.bfloat16), preferred_element_type=jnp.float32) + b
        h = jnp.tanh(z).astype(jnp.bfloat16)
    w, b = params[-1]
    logits = jnp.dot(h, w.astype(jnp.bfloat16), preferred_element_type=jnp.float32) + b
    return jax.nn.sigmoid(logits)


if __name__ == "__main__":
    ARCH = [32, 64, 32]  # hidden architecture; NLA = tanh
    BATCH = 16           # small, ragged-friendly (padded to the batch tile internally)

    key = jax.random.PRNGKey(0)
    key, kx = jax.random.split(key)
    x = jax.random.normal(kx, (BATCH, ARCH[0]), jnp.float32)

    params = init_params(key, ARCH)

    p = bernoulli_mlp_forward(x, params, block_batch=512, nla="tanh")
    p = jax.block_until_ready(p)

    assert p.shape == (BATCH, 1)
    # Tight check against a bf16-matched pure-JAX reference.
    p_ref_bf16 = reference_forward_bf16(x, params)
    assert jnp.allclose(p, p_ref_bf16, atol=5e-3, rtol=5e-3), "mismatch vs bf16 reference"
    # Looser check against the full-f32 reference (bf16 quantization error bound).
    p_ref_f32 = reference_forward_f32(x, params)
    assert jnp.allclose(p, p_ref_f32, atol=5e-2, rtol=5e-2), "mismatch vs f32 reference"

    print("KERNEL_OK")
</pallas_src>

<mosaic_0001>
module attributes {stable_mosaic.version = 11 : i64} {
  func.func @_mlp_kernel(%arg0: i32, %arg1: memref<16x32xbf16, #tpu.memory_space<vmem>>, %arg2: memref<32x64xbf16, #tpu.memory_space<vmem>>, %arg3: memref<1x64xf32, #tpu.memory_space<vmem>>, %arg4: memref<64x32xbf16, #tpu.memory_space<vmem>>, %arg5: memref<1x32xf32, #tpu.memory_space<vmem>>, %arg6: memref<1x32xbf16, #tpu.memory_space<vmem>>, %arg7: memref<1x1xf32, #tpu.memory_space<vmem>>, %arg8: memref<1x16xf32, #tpu.memory_space<vmem>>) attributes {dimension_semantics = [#tpu.dimension_semantics<parallel>], iteration_bounds = array<i64: 1>, scalar_prefetch = 0 : i64, scratch_operands = 0 : i64, tpu.core_type = #tpu.core_type<tc>, window_params = [{transform_indices = @transform_0, window_bounds = array<i64: 16, 32>}, {pipeline_mode = #tpu.pipeline_mode<synchronous>, transform_indices = @transform_1, window_bounds = array<i64: 32, 64>}, {pipeline_mode = #tpu.pipeline_mode<synchronous>, transform_indices = @transform_2, window_bounds = array<i64: 1, 64>}, {pipeline_mode = #tpu.pipeline_mode<synchronous>, transform_indices = @transform_3, window_bounds = array<i64: 64, 32>}, {pipeline_mode = #tpu.pipeline_mode<synchronous>, transform_indices = @transform_4, window_bounds = array<i64: 1, 32>}, {pipeline_mode = #tpu.pipeline_mode<synchronous>, transform_indices = @transform_5, window_bounds = array<i64: 1, 32>}, {pipeline_mode = #tpu.pipeline_mode<synchronous>, transform_indices = @transform_6, window_bounds = array<i64: 1, 1>}, {transform_indices = @transform_7, window_bounds = array<i64: 1, 16>}]} {
    %c0 = arith.constant 0 : index
    %c0_0 = arith.constant 0 : index
    %0 = vector.load %arg1[%c0, %c0_0] : memref<16x32xbf16, #tpu.memory_space<vmem>>, vector<16x32xbf16>
    %c0_1 = arith.constant 0 : index
    %c0_2 = arith.constant 0 : index
    %1 = vector.load %arg2[%c0_1, %c0_2] : memref<32x64xbf16, #tpu.memory_space<vmem>>, vector<32x64xbf16>
    %cst = arith.constant dense<0.000000e+00> : vector<16x64xf32>
    %2 = tpu.matmul %0, %1, %cst {dimension_numbers = #tpu.dot_dimension_numbers<[1], [0], [0], [1], [0, 0, 1, 1], [], []>} : vector<16x32xbf16>, vector<32x64xbf16>, vector<16x64xf32> -> vector<16x64xf32>
    %c0_3 = arith.constant 0 : index
    %c0_4 = arith.constant 0 : index
    %3 = vector.load %arg3[%c0_3, %c0_4] : memref<1x64xf32, #tpu.memory_space<vmem>>, vector<1x64xf32>
    %4 = vector.broadcast %3 : vector<1x64xf32> to vector<16x64xf32>
    %5 = arith.addf %2, %4 : vector<16x64xf32>
    %6 = math.tanh %5 : vector<16x64xf32>
    %7 = arith.truncf %6 : vector<16x64xf32> to vector<16x64xbf16>
    %c0_5 = arith.constant 0 : index
    %c0_6 = arith.constant 0 : index
    %8 = vector.load %arg4[%c0_5, %c0_6] : memref<64x32xbf16, #tpu.memory_space<vmem>>, vector<64x32xbf16>
    %cst_7 = arith.constant dense<0.000000e+00> : vector<16x32xf32>
    %9 = tpu.matmul %7, %8, %cst_7 {dimension_numbers = #tpu.dot_dimension_numbers<[1], [0], [0], [1], [0, 0, 1, 1], [], []>} : vector<16x64xbf16>, vector<64x32xbf16>, vector<16x32xf32> -> vector<16x32xf32>
    %c0_8 = arith.constant 0 : index
    %c0_9 = arith.constant 0 : index
    %10 = vector.load %arg5[%c0_8, %c0_9] : memref<1x32xf32, #tpu.memory_space<vmem>>, vector<1x32xf32>
    %11 = vector.broadcast %10 : vector<1x32xf32> to vector<16x32xf32>
    %12 = arith.addf %9, %11 : vector<16x32xf32>
    %13 = math.tanh %12 : vector<16x32xf32>
    %14 = arith.truncf %13 : vector<16x32xf32> to vector<16x32xbf16>
    %c0_10 = arith.constant 0 : index
    %c0_11 = arith.constant 0 : index
    %15 = vector.load %arg6[%c0_10, %c0_11] : memref<1x32xbf16, #tpu.memory_space<vmem>>, vector<1x32xbf16>
    %cst_12 = arith.constant dense<0.000000e+00> : vector<1x16xf32>
    %16 = tpu.matmul %15, %14, %cst_12 {dimension_numbers = #tpu.dot_dimension_numbers<[1], [1], [0], [0], [0, 0, 1, 0], [], []>} : vector<1x32xbf16>, vector<16x32xbf16>, vector<1x16xf32> -> vector<1x16xf32>
    %c0_13 = arith.constant 0 : index
    %c0_14 = arith.constant 0 : index
    %17 = vector.load %arg7[%c0_13, %c0_14] : memref<1x1xf32, #tpu.memory_space<vmem>>, vector<1x1xf32>
    %18 = vector.broadcast %17 : vector<1x1xf32> to vector<1x16xf32>
    %19 = arith.addf %16, %18 : vector<1x16xf32>
    %20 = arith.negf %19 : vector<1x16xf32>
    %21 = math.exp %20 : vector<1x16xf32>
    %cst_15 = arith.constant 1.000000e+00 : f32
    %22 = vector.broadcast %cst_15 : f32 to vector<1x16xf32>
    %23 = arith.addf %22, %21 : vector<1x16xf32>
    %24 = arith.divf %22, %23 : vector<1x16xf32>
    %c0_16 = arith.constant 0 : index
    %c0_17 = arith.constant 0 : index
    %25 = vector.load %arg8[%c0_16, %c0_17] : memref<1x16xf32, #tpu.memory_space<vmem>>, vector<1x16xf32>
    tpu.vector_store %arg8[%c0_16, %c0_17], %24 {strides = array<i32>} : memref<1x16xf32, #tpu.memory_space<vmem>>, vector<1x16xf32>,
    return
  }
  func.func @transform_0(%arg0: i32) -> (i32, i32) {
    %c0_i32 = arith.constant 0 : i32
    %c0_i32_0 = arith.constant 0 : i32
    return %arg0, %c0_i32 : i32, i32
  }
  func.func @transform_1(%arg0: i32) -> (i32, i32) {
    %c0_i32 = arith.constant 0 : i32
    %c0_i32_0 = arith.constant 0 : i32
    %c0_i32_1 = arith.constant 0 : i32
    return %c0_i32, %c0_i32_0 : i32, i32
  }
  func.func @transform_2(%arg0: i32) -> (i32, i32) {
    %c0_i32 = arith.constant 0 : i32
    %c0_i32_0 = arith.constant 0 : i32
    %c0_i32_1 = arith.constant 0 : i32
    return %c0_i32, %c0_i32_0 : i32, i32
  }
  func.func @transform_3(%arg0: i32) -> (i32, i32) {
    %c0_i32 = arith.constant 0 : i32
    %c0_i32_0 = arith.constant 0 : i32
    %c0_i32_1 = arith.constant 0 : i32
    return %c0_i32, %c0_i32_0 : i32, i32
  }
  func.func @transform_4(%arg0: i32) -> (i32, i32) {
    %c0_i32 = arith.constant 0 : i32
    %c0_i32_0 = arith.constant 0 : i32
    %c0_i32_1 = arith.constant 0 : i32
    return %c0_i32, %c0_i32_0 : i32, i32
  }
  func.func @transform_5(%arg0: i32) -> (i32, i32) {
    %c0_i32 = arith.constant 0 : i32
    %c0_i32_0 = arith.constant 0 : i32
    %c0_i32_1 = arith.constant 0 : i32
    return %c0_i32, %c0_i32_0 : i32, i32
  }
  func.func @transform_6(%arg0: i32) -> (i32, i32) {
    %c0_i32 = arith.constant 0 : i32
    %c0_i32_0 = arith.constant 0 : i32
    %c0_i32_1 = arith.constant 0 : i32
    return %c0_i32, %c0_i32_0 : i32, i32
  }
  func.func @transform_7(%arg0: i32) -> (i32, i32) {
    %c0_i32 = arith.constant 0 : i32
    %c0_i32_0 = arith.constant 0 : i32
    return %arg0, %c0_i32 : i32, i32
  }
}

</mosaic_0001>

<bundles_post_ra>
// kernel: tpu_custom_call.1
= control target key start
LH: loop header
LB: loop body
LE: loop exit
PB: predicated region body
PF: predicated region fallthrough
CT: control target
= control target key end

     0   :  { %s362_s0 = inlined_call_operand.vmem [shape: bf16[16,32], index: 0, kind: input, shape index: {}]   ;;  %s363_s1 = inlined_call_operand.vmem [shape: bf16[32,64], index: 1, kind: input, shape index: {}]   ;;  %s364_s2 = inlined_call_operand.vmem [shape: f32[1,64], index: 2, kind: input, shape index: {}]   ;;  %s365_s3 = inlined_call_operand.vmem [shape: bf16[64,32], index: 3, kind: input, shape index: {}]   ;;  %s366_s4 = inlined_call_operand.vmem [shape: f32[1,32], index: 4, kind: input, shape index: {}]   ;;  %s367_s5 = inlined_call_operand.vmem [shape: bf16[1,32], index: 5, kind: input, shape index: {}]   ;;  %s368_s6 = inlined_call_operand.<no memory space> [shape: f32[1,1], index: 6, kind: input, shape index: {}]   ;;  %s369_s7 = inlined_call_operand.hbm [shape: f32[1,16], index: 7, kind: output, shape index: {}]  }
   0x1   :  { %v12_v0 = vstv %s368_s6 }
   0x2   :  { %13 = vst [vmem:[#allocation2] sm:$0x1] %v12_v0 }
   0x3   :  { %v233_v1 = vld [vmem:[%s363_s1 + $0x8] sm:$0xff]  ;;  %v232_v2 = vld [vmem:[%s363_s1] sm:$0xff] }
   0x4   :  { %67 = vmatpush.bf16.msra.mxu0 %v233_v1 }
   0x5   :  { %14 = vsyncpa [#allocation4], 0  ;;  %v231_v3 = vld [vmem:[%s362_s0] sm:$0xff]  ;;  %vm57_vm0 = vcmask 261120   ;;  %v237_v4 = vld [vmem:[%s365_s3 + $0x18] sm:$0xff]  ;;  %vm114_vm1 = vcmask 523264  }
   0x6   :  { %122 = vmatpush.bf16.msra.mxu1 %v237_v4  ;;  %v236_v5 = vld [vmem:[%s365_s3 + $0x10] sm:$0xff]  ;;  %v235_v6 = vld [vmem:[%s365_s3 + $0x8] sm:$0xff]  ;;  %v234_v7 = vld [vmem:[%s365_s3] sm:$0xff]  ;;  %v281_v17 = vmov 0   ;;  %s190_s20 = sshll.u32 %s369_s7, 4  ;;  %vm181_vm5 = vcmask 122880   ;;  %s191_s20 = int_to_ptr.hbm [resolvable:$true] %s190_s20 }
   0x7   :  { %v241_v9 = vld [vmem:[%s364_s2] ss:$0 sm:$0xff]  ;;  %240 = vset.pattern.permute.xlu0 %v281_v17 }
   0x8   :  { %68 = vmatpush.bf16.msra.mxu0 %v232_v2  ;;  %v242_v19 = vld [vmem:[%s366_s4] ss:$0 sm:$0xff]  ;;  %s282_s4 = smov [#allocation3]  }
   0x9   :  { %v136_v16 = vld [vmem:[#allocation2] sm:$0x1] }
   0xa   :  { %123 = vmatpush.bf16.msra.mxu1 %v236_v5  ;;  %139 = vperm.xlu0 %240, %v136_v16   ;;  %v135_v27 = vld [vmem:[%s367_s5] sm:$0x1]  ;;  %s188_s5 = sshll.u32 %s282_s4, 4  ;;  %s189_s5 = int_to_ptr.vmem [resolvable:$true] %s188_s5 }
   0xb   :  { %211 = vmatmul.msk.bf16.vlgmr.msra.gmra.mxu0 %vm57_vm0, %v231_v3 }
   0xe   :  { %124 = vmatpush.bf16.msra.mxu1 %v235_v6 }
  0x12   :  { %125 = vmatpush.bf16.msra.mxu1 %v234_v7 }
  0x7c   :  { %v140_v28 = vpop.permute.xlu0 %139 }
  0x7d   :  { %v142_v29 = vperm.slane %v140_v28, 0 }
  0x88   :  { %v70_v8 = vpop.f32.mrf.mxu0 }
  0x89   :  { %v71_v10 = vadd.f32 %v241_v9, %v70_v8 }
  0x8b   :  { %243 = vtanh.f32 %v71_v10 }
  0x90   :  { %v72_v11 = vpop.f32.mrf.mxu0 }
  0x91   :  { %v73_v12 = vadd.f32 %v241_v9, %v72_v11  ;;  %v244_v13 = vpop.eup %243 }
  0x93   :  { %245 = vtanh.f32 %v73_v12 }
  0x99   :  { %v246_v14 = vpop.eup %245 }
  0x9a   :  { %v77_v15 = vpack.c.bf16 %v246_v14, %v244_v13 }
  0x9c   :  { %228 = vmatmul.msk.bf16.vlgmr.msra.gmra.mxu1 %vm114_vm1, %v77_v15 }
 0x119   :  { %v127_v18 = vpop.f32.mrf.mxu1 }
 0x11a   :  { %v128_v20 = vadd.f32 %v242_v19, %v127_v18 }
 0x11c   :  { %247 = vtanh.f32 %v128_v20 }
 0x121   :  { %v129_v21 = vpop.f32.mrf.mxu1 }
 0x122   :  { %v130_v22 = vadd.f32 %v242_v19, %v129_v21  ;;  %v248_v23 = vpop.eup %247 }
 0x124   :  { %249 = vtanh.f32 %v130_v22 }
 0x12a   :  { %v250_v24 = vpop.eup %249 }
 0x12b   :  { %v134_v25 = vpack.c.bf16 %v250_v24, %v248_v23 }
 0x12d   :  { %v147_v26 = vsel %vm57_vm0, %v134_v25, 0 }
 0x12e   :  { %156 = vmatpush.bf16.xpose.msra.mxu2 %v147_v26 }
 0x135   :  { %229 = vmatmul.msk.bf16.vlgmr.msra.gmra.mxu2 %vm57_vm0, %v135_v27 }
 0x1b8   :  { %v158_v30 = vpop.f32.mrf.mxu2 }
 0x1b9   :  { %v159_v31 = vadd.f32 %v158_v30, %v142_v29 }
 0x1bb   :  { %v230_v32 = vmul.f32 -1.442695, %v159_v31 }
 0x1bd   :  { %251 = vpow2.f32 %v230_v32 }
 0x1c0   :  { %v160_v33 = vpop.f32.mrf.mxu2 }
 0x1c3   :  { %v252_v34 = vpop.eup %251 }
 0x1c4   :  { %v165_v35 = vadd.f32 1.0, %v252_v34 }
 0x1c6   :  { %253 = vrcp.f32 %v165_v35  ;;  %v177_v39 = vand.u32 2147483648, %v165_v35  ;;  %v175_v41 = vand.u32 2147483647, %v165_v35  ;;  %vm171_vm3 = vweird.f32 %v165_v35 }
 0x1c8   :  { %v178_v43 = vor.u32 1.1754944e-38, %v177_v39  ;;  %vm176_vm6 = vcmp.eq.f32.partialorder %v175_v41, 8.507059e+37 }
 0x1cc   :  { %v254_v36 = vpop.eup %253 }
 0x1cd   :  { %v167_v37 = vmul.f32 %v254_v36, %v165_v35  ;;  %vm172_vm2 = vweird.f32 %v254_v36 }
 0x1ce   :  { %vm173_vm4 = vmor %vm171_vm3, %vm172_vm2 }
 0x1cf   :  { %v168_v38 = vsub.f32 1.0, %v167_v37 }
 0x1d1   :  { %v169_v40 = vmul.f32 %v254_v36, %v168_v38 }
 0x1d3   :  { %v170_v42 = vadd.f32 %v254_v36, %v169_v40 }
 0x1d5   :  { %v174_v44 = vsel %vm173_vm4, %v254_v36, %v170_v42 }
 0x1d6   :  { %v179_v45 = vsel %vm176_vm6, %v178_v43, %v174_v44 }
 0x1d7   :  { %182 = vst.msk [vmem:[#allocation3] sm:$0x1] %vm181_vm5, %v179_v45 }
 0x1d8   :  { %193 = dma.vmem_to_hbm [thread:$0]  %s189_s5, 16, %s191_s20, [#allocation4]  }
 0x1d9   :  { %279 = dma.done.wait [#allocation4], 16  }
 0x1da   :  { %280 = vsyncadd [#allocation4], 4294967280 }
 0x1db   :  { %198 = vsyncpa [#allocation4], 1 }

</bundles_post_ra>
